<compile_context>
chip_gen: v6e
topology: v6e:2x2x1
jax: 0.10.0
libtpu: 0.0.40
codegen_flags: <defaults>
</compile_context>

<pallas_src>
import jax
import jax.numpy as jnp
from jax import lax
from jax.experimental import pallas as pl
from jax.experimental.pallas import tpu as pltpu

_TWO_PI = 6.283185307179586


def _hash_u32(x):
    """splitmix32-style finalizer on a uint32 array (all VPU int ops)."""
    x = x ^ (x >> jnp.uint32(16))
    x = x * jnp.uint32(0x7FEB352D)
    x = x ^ (x >> jnp.uint32(15))
    x = x * jnp.uint32(0x846CA68B)
    x = x ^ (x >> jnp.uint32(16))
    return x


def _bits_to_uniform(bits):
    """uint32 bits -> float32 uniform in [0, 1) via the mantissa trick."""
    mant = (bits >> jnp.uint32(9)) | jnp.uint32(0x3F800000)  # float in [1, 2)
    return lax.bitcast_convert_type(mant, jnp.float32) - jnp.float32(1.0)


def _policy_head_kernel(seed_ref, out_ref):
    tb, na = out_ref.shape
    tile = pl.program_id(0)
    seed = seed_ref[0].astype(jnp.uint32)

    def draw_bits(shape, stream):
        # Globally-unique per-element counter (tile offset keeps grid blocks
        # distinct), mixed with the seed, then hashed.
        row = lax.broadcasted_iota(jnp.int32, shape, 0)
        col = lax.broadcasted_iota(jnp.int32, shape, 1)
        gidx = ((tile * tb + row) * na + col).astype(jnp.uint32)
        mixed = gidx * jnp.uint32(2654435761) + seed * jnp.uint32(0x9E3779B9)
        return _hash_u32(mixed ^ jnp.uint32(stream))

    if na % 2 == 0:
        # Paired Box-Muller: one (u1, u2) pair -> two outputs (cos & sin).
        half = na // 2
        shape = (tb, half)
        u1 = jnp.float32(1.0) - _bits_to_uniform(draw_bits(shape, 0x68E31DA4))  # (0, 1]
        u2 = _bits_to_uniform(draw_bits(shape, 0xB5297A4D))
        r = jnp.sqrt(jnp.float32(-2.0) * jnp.log(u1))
        theta = jnp.float32(_TWO_PI) * u2
        out_ref[...] = jnp.concatenate(
            [r * jnp.cos(theta), r * jnp.sin(theta)], axis=-1
        )
    else:
        # Odd action count: cos-only Box-Muller over the full tile.
        shape = (tb, na)
        u1 = jnp.float32(1.0) - _bits_to_uniform(draw_bits(shape, 0x68E31DA4))
        u2 = _bits_to_uniform(draw_bits(shape, 0xB5297A4D))
        r = jnp.sqrt(jnp.float32(-2.0) * jnp.log(u1))
        out_ref[...] = r * jnp.cos(jnp.float32(_TWO_PI) * u2)


def mock_policy_head(fused_embeddings_batch, num_actions, seed=0, block_batch=1024):
    """JAX/Pallas equivalent of MockPolicyHead.forward().

    The reference module only uses batch_size, so the embeddings array is
    never sent to the kernel (no HBM read traffic at all).
    """
    batch = fused_embeddings_batch.shape[0]
    # Batch tiling: small batches use one full-array block (satisfies the
    # (8, 128) rule by matching the full array dims); large batches tile with
    # a sublane-aligned block so output stays within the v7x 64 MiB VMEM.
    if batch <= block_batch or batch % block_batch != 0:
        tb = batch
    else:
        tb = block_batch
    grid = (batch // tb,)

    seed_arr = jnp.asarray([seed], dtype=jnp.int32)
    # TODO(synk): torch.randn draws fresh values from a global RNG each call;
    # here randomness is deterministic per `seed` — thread a step counter in
    # as the seed if fresh draws per forward() are needed.
    return pl.pallas_call(
        _policy_head_kernel,
        out_shape=jax.ShapeDtypeStruct((batch, num_actions), jnp.float32),
        grid_spec=pltpu.PrefetchScalarGridSpec(
            num_scalar_prefetch=1,              # seed -> SMEM
            grid=grid,
            in_specs=[],                        # embeddings never enter the kernel
            out_specs=pl.BlockSpec((tb, num_actions), lambda i, seed: (i, 0)),
        ),
        compiler_params=pltpu.CompilerParams(
            dimension_semantics=("parallel",),  # batch tiles are independent
        ),
    )(seed_arr)


if __name__ == "__main__":
    # Small shapes consistent with the module: batch=2, embed_dim=32,
    # num_actions=128 (lane-friendly multiple of 128).
    batch, embed_dim, num_actions = 2, 32, 128

    key = jax.random.PRNGKey(0)
    fused_embeddings = jax.random.normal(key, (batch, embed_dim), dtype=jnp.float32)

    logits = mock_policy_head(fused_embeddings, num_actions, seed=0)
    logits = jax.block_until_ready(logits)

    assert logits.shape == (batch, num_actions)
    assert logits.dtype == jnp.float32
    assert bool(jnp.all(jnp.isfinite(logits)))
    assert float(jnp.std(logits)) > 0.1  # actually random-looking, ~N(0,1)
    print("KERNEL_OK")
</pallas_src>

<mosaic_0001>
module attributes {stable_mosaic.version = 11 : i64} {
  func.func @_policy_head_kernel(%arg0: i32, %arg1: memref<1xi32, #tpu.memory_space<smem>>, %arg2: memref<2x128xf32, #tpu.memory_space<vmem>>) attributes {dimension_semantics = [#tpu.dimension_semantics<parallel>], iteration_bounds = array<i64: 1>, scalar_prefetch = 1 : i64, scratch_operands = 0 : i64, tpu.core_type = #tpu.core_type<tc>, window_params = [{transform_indices = @transform_0, window_bounds = array<i64: 2, 128>}]} {
    %c0 = arith.constant 0 : index
    %0 = memref.load %arg1[%c0] : memref<1xi32, #tpu.memory_space<smem>>
    %1 = tpu.iota {dimensions = array<i32: 0>} : vector<2x64xi32>
    %2 = tpu.iota {dimensions = array<i32: 1>} : vector<2x64xi32>
    %c2_i32 = arith.constant 2 : i32
    %3 = arith.muli %arg0, %c2_i32 : i32
    %4 = vector.broadcast %3 : i32 to vector<2x64xi32>
    %5 = arith.addi %4, %1 : vector<2x64xi32>
    %c128_i32 = arith.constant 128 : i32
    %6 = vector.broadcast %c128_i32 : i32 to vector<2x64xi32>
    %7 = arith.muli %5, %6 : vector<2x64xi32>
    %8 = arith.addi %7, %2 : vector<2x64xi32>
    %c-1640531535_i32 = arith.constant -1640531535 : i32
    %9 = vector.broadcast %c-1640531535_i32 : i32 to vector<2x64xi32>
    %10 = arith.muli %8, %9 : vector<2x64xi32>
    %c-1640531527_i32 = arith.constant -1640531527 : i32
    %11 = arith.muli %0, %c-1640531527_i32 : i32
    %12 = vector.broadcast %11 : i32 to vector<2x64xi32>
    %13 = arith.addi %10, %12 : vector<2x64xi32>
    %c1759714724_i32 = arith.constant 1759714724 : i32
    %14 = vector.broadcast %c1759714724_i32 : i32 to vector<2x64xi32>
    %15 = arith.xori %13, %14 : vector<2x64xi32>
    %c16_i32 = arith.constant 16 : i32
    %16 = vector.broadcast %c16_i32 : i32 to vector<2x64xi32>
    %17 = arith.shrui %15, %16 : vector<2x64xi32>
    %18 = arith.xori %15, %17 : vector<2x64xi32>
    %c2146121005_i32 = arith.constant 2146121005 : i32
    %19 = vector.broadcast %c2146121005_i32 : i32 to vector<2x64xi32>
    %20 = arith.muli %18, %19 : vector<2x64xi32>
    %c15_i32 = arith.constant 15 : i32
    %21 = vector.broadcast %c15_i32 : i32 to vector<2x64xi32>
    %22 = arith.shrui %20, %21 : vector<2x64xi32>
    %23 = arith.xori %20, %22 : vector<2x64xi32>
    %c-2073254261_i32 = arith.constant -2073254261 : i32
    %24 = vector.broadcast %c-2073254261_i32 : i32 to vector<2x64xi32>
    %25 = arith.muli %23, %24 : vector<2x64xi32>
    %c16_i32_0 = arith.constant 16 : i32
    %26 = vector.broadcast %c16_i32_0 : i32 to vector<2x64xi32>
    %27 = arith.shrui %25, %26 : vector<2x64xi32>
    %28 = arith.xori %25, %27 : vector<2x64xi32>
    %c9_i32 = arith.constant 9 : i32
    %29 = vector.broadcast %c9_i32 : i32 to vector<2x64xi32>
    %30 = arith.shrui %28, %29 : vector<2x64xi32>
    %c1065353216_i32 = arith.constant 1065353216 : i32
    %31 = vector.broadcast %c1065353216_i32 : i32 to vector<2x64xi32>
    %32 = arith.ori %30, %31 : vector<2x64xi32>
    %33 = tpu.bitcast %32 : vector<2x64xi32> -> vector<2x64xf32>
    %cst = arith.constant 1.000000e+00 : f32
    %34 = vector.broadcast %cst : f32 to vector<2x64xf32>
    %35 = arith.subf %33, %34 : vector<2x64xf32>
    %cst_1 = arith.constant 1.000000e+00 : f32
    %36 = vector.broadcast %cst_1 : f32 to vector<2x64xf32>
    %37 = arith.subf %36, %35 : vector<2x64xf32>
    %38 = tpu.iota {dimensions = array<i32: 0>} : vector<2x64xi32>
    %39 = tpu.iota {dimensions = array<i32: 1>} : vector<2x64xi32>
    %c2_i32_2 = arith.constant 2 : i32
    %40 = arith.muli %arg0, %c2_i32_2 : i32
    %41 = vector.broadcast %40 : i32 to vector<2x64xi32>
    %42 = arith.addi %41, %38 : vector<2x64xi32>
    %c128_i32_3 = arith.constant 128 : i32
    %43 = vector.broadcast %c128_i32_3 : i32 to vector<2x64xi32>
    %44 = arith.muli %42, %43 : vector<2x64xi32>
    %45 = arith.addi %44, %39 : vector<2x64xi32>
    %c-1640531535_i32_4 = arith.constant -1640531535 : i32
    %46 = vector.broadcast %c-1640531535_i32_4 : i32 to vector<2x64xi32>
    %47 = arith.muli %45, %46 : vector<2x64xi32>
    %c-1640531527_i32_5 = arith.constant -1640531527 : i32
    %48 = arith.muli %0, %c-1640531527_i32_5 : i32
    %49 = vector.broadcast %48 : i32 to vector<2x64xi32>
    %50 = arith.addi %47, %49 : vector<2x64xi32>
    %c-1255572915_i32 = arith.constant -1255572915 : i32
    %51 = vector.broadcast %c-1255572915_i32 : i32 to vector<2x64xi32>
    %52 = arith.xori %50, %51 : vector<2x64xi32>
    %c16_i32_6 = arith.constant 16 : i32
    %53 = vector.broadcast %c16_i32_6 : i32 to vector<2x64xi32>
    %54 = arith.shrui %52, %53 : vector<2x64xi32>
    %55 = arith.xori %52, %54 : vector<2x64xi32>
    %c2146121005_i32_7 = arith.constant 2146121005 : i32
    %56 = vector.broadcast %c2146121005_i32_7 : i32 to vector<2x64xi32>
    %57 = arith.muli %55, %56 : vector<2x64xi32>
    %c15_i32_8 = arith.constant 15 : i32
    %58 = vector.broadcast %c15_i32_8 : i32 to vector<2x64xi32>
    %59 = arith.shrui %57, %58 : vector<2x64xi32>
    %60 = arith.xori %57, %59 : vector<2x64xi32>
    %c-2073254261_i32_9 = arith.constant -2073254261 : i32
    %61 = vector.broadcast %c-2073254261_i32_9 : i32 to vector<2x64xi32>
    %62 = arith.muli %60, %61 : vector<2x64xi32>
    %c16_i32_10 = arith.constant 16 : i32
    %63 = vector.broadcast %c16_i32_10 : i32 to vector<2x64xi32>
    %64 = arith.shrui %62, %63 : vector<2x64xi32>
    %65 = arith.xori %62, %64 : vector<2x64xi32>
    %c9_i32_11 = arith.constant 9 : i32
    %66 = vector.broadcast %c9_i32_11 : i32 to vector<2x64xi32>
    %67 = arith.shrui %65, %66 : vector<2x64xi32>
    %c1065353216_i32_12 = arith.constant 1065353216 : i32
    %68 = vector.broadcast %c1065353216_i32_12 : i32 to vector<2x64xi32>
    %69 = arith.ori %67, %68 : vector<2x64xi32>
    %70 = tpu.bitcast %69 : vector<2x64xi32> -> vector<2x64xf32>
    %cst_13 = arith.constant 1.000000e+00 : f32
    %71 = vector.broadcast %cst_13 : f32 to vector<2x64xf32>
    %72 = arith.subf %70, %71 : vector<2x64xf32>
    %73 = math.log %37 : vector<2x64xf32>
    %cst_14 = arith.constant -2.000000e+00 : f32
    %74 = vector.broadcast %cst_14 : f32 to vector<2x64xf32>
    %75 = arith.mulf %74, %73 : vector<2x64xf32>
    %76 = math.sqrt %75 : vector<2x64xf32>
    %cst_15 = arith.constant 6.28318548 : f32
    %77 = vector.broadcast %cst_15 : f32 to vector<2x64xf32>
    %78 = arith.mulf %77, %72 : vector<2x64xf32>
    %79 = math.cos %78 : vector<2x64xf32>
    %80 = arith.mulf %76, %79 : vector<2x64xf32>
    %81 = math.sin %78 : vector<2x64xf32>
    %82 = arith.mulf %76, %81 : vector<2x64xf32>
    %83 = tpu.concatenate %80, %82 in 1 : vector<2x64xf32>, vector<2x64xf32> -> vector<2x128xf32>
    %c0_16 = arith.constant 0 : index
    %c0_17 = arith.constant 0 : index
    %84 = vector.load %arg2[%c0_16, %c0_17] : memref<2x128xf32, #tpu.memory_space<vmem>>, vector<2x128xf32>
    tpu.vector_store %arg2[%c0_16, %c0_17], %83 {strides = array<i32>} : memref<2x128xf32, #tpu.memory_space<vmem>>, vector<2x128xf32>,
    return
  }
  func.func @transform_0(%arg0: i32, %arg1: memref<1xi32, #tpu.memory_space<smem>>) -> (i32, i32) {
    %c0_i32 = arith.constant 0 : i32
    %c0_i32_0 = arith.constant 0 : i32
    return %arg0, %c0_i32 : i32, i32
  }
}

</mosaic_0001>

<bundles_post_ra>
// kernel: tpu_custom_call.1
= control target key start
LH: loop header
LB: loop body
LE: loop exit
PB: predicated region body
PF: predicated region fallthrough
CT: control target
= control target key end

     0   :  { %v9_v0 = vlaneseq  ;;  %s387_s0 = inlined_call_operand.<no memory space> [shape: s32[1], index: 0, kind: input, shape index: {}]   ;;  %s388_s1 = inlined_call_operand.hbm [shape: f32[2,128], index: 1, kind: output, shape index: {}]  }
   0x1   :  { %s19_s8 = smul.u32 2654435769, %s387_s0 }
   0x2   :  { %v10_v1 = vshrl.u32 %v9_v0, 7  ;;  %v12_v2 = vand.u32 127, %v9_v0 }
   0x3   :  { %7 = vsyncpa [#allocation5], 0  ;;  %v20_v5 = vstv %s19_s8  ;;  %v342_v39 = vmov 683565275   ;;  %v343_v41 = vmov 2475754826  }
   0x4   :  { %v16_v3 = vmul.u32 128, %v10_v1  ;;  %v344_v43 = vmov 2131351028   ;;  %v345_v45 = vmov 2102212464   ;;  %s348_s0 = smov 64  }
   0x5   :  { %v346_v47 = vmov 920167782   ;;  %v347_v56 = vmov 1326507024   ;;  %s349_s9 = smov [#allocation4]  }
   0x6   :  { %v17_v4 = vadd.s32 %v16_v3, %v12_v2  ;;  %s282_s10 = sshll.u32 %s349_s9, 4  ;;  %s283_s10 = int_to_ptr.vmem [resolvable:$true] %s282_s10 }
   0x7   :  { %s320_s11 = scalar_lea.vmem %s283_s10, 32  ;;  %p325_p1 = scmp.lt.s32.totalorder %s283_s10, %s283_s10 }
   0x8   :  { %v18_v6 = vmul.u32 2654435761, %v17_v4  ;;  %p321_p0 = scmp.ne.s32.totalorder %s283_s10, %s320_s11  ;;  %p326_p2 = scmp.lt.s32.totalorder %s320_s11, %s320_s11 }
   0xa   :  { %v21_v7 = vadd.s32 %v20_v5, %v18_v6  ;;  %p327_p3 = por %p326_p2, %p325_p1 }
   0xc   :  { %v36_v8 = vxor.u32 3039394381, %v21_v7  ;;  %v22_v12 = vxor.u32 1759714724, %v21_v7  ;;  %p328_p4 = pnand %p327_p3, %p321_p0 }
   0xe   :  { %v37_v9 = vshrl.u32 %v36_v8, 16  ;;  %v23_v15 = vshrl.u32 %v22_v12, 16 }
  0x10   :  { %v38_v10 = vxor.u32 %v37_v9, %v36_v8  ;;  %v24_v18 = vxor.u32 %v23_v15, %v22_v12 }
  0x12   :  { %v39_v11 = vmul.u32 2146121005, %v38_v10  ;;  %v25_v21 = vmul.u32 2146121005, %v24_v18 }
  0x14   :  { %v40_v13 = vshrl.u32 %v39_v11, 15  ;;  %v26_v24 = vshrl.u32 %v25_v21, 15 }
  0x16   :  { %v41_v14 = vxor.u32 %v40_v13, %v39_v11  ;;  %v27_v27 = vxor.u32 %v26_v24, %v25_v21 }
  0x18   :  { %v42_v16 = vmul.u32 2221713035, %v41_v14  ;;  %v28_v30 = vmul.u32 2221713035, %v27_v27 }
  0x1a   :  { %v43_v17 = vshrl.u32 %v42_v16, 16  ;;  %v29_v34 = vshrl.u32 %v28_v30, 16 }
  0x1c   :  { %v44_v19 = vxor.u32 %v43_v17, %v42_v16  ;;  %v30_v49 = vxor.u32 %v29_v34, %v28_v30 }
  0x1e   :  { %v45_v20 = vshrl.u32 %v44_v19, 9  ;;  %v31_v63 = vshrl.u32 %v30_v49, 9 }
  0x20   :  { %v46_v22 = vor.u32 1065353216, %v45_v20  ;;  %v32_v15 = vor.u32 1065353216, %v31_v63 }
  0x22   :  { %v291_v23 = vadd.f32 -1.0, %v46_v22  ;;  %v290_v20 = vadd.f32 -1.0, %v32_v15 }
  0x24   :  { %v363_v25 = vmul.f32 6.2831855, %v291_v23  ;;  %v35_v23 = vsub.f32 1.0, %v290_v20 }
  0x26   :  { %v63_v26 = vand.u32 2139095040, %v363_v25  ;;  %v60_v31 = vand.u32 2147483647, %v363_v25  ;;  %312 = vlog2.f32 %v35_v23  ;;  %vm62_vm7 = vcmp.lt.s32.totalorder %v363_v25, 0 }
  0x28   :  { %v64_v28 = vshrl.u32 %v63_v26, 23  ;;  %v67_v35 = vand.u32 8388607, %v60_v31  ;;  %vm61_vm8 = vcmp.le.f32.partialorder %v60_v31, 0.7853982 }
  0x2a   :  { %v292_v29 = vadd.s32 4294967169, %v64_v28  ;;  %v68_v50 = vor.u32 8388608, %v67_v35 }
  0x2c   :  { %v70_v32 = vadd.s32 1, %v292_v29  ;;  %v108_v0 = vshll.u32 %v68_v50, 8 }
  0x2e   :  { %vm71_vm0 = vcmp.gt.s32.totalorder %v70_v32, 0 }
  0x2f   :  { %v72_v33 = vsel %vm71_vm0, %v70_v32, 0 }
  0x30   :  { %v74_v36 = vand.u32 31, %v72_v33  ;;  %v73_v37 = vshrl.u32 %v72_v33, 5 }
  0x32   :  { %v75_v38 = vsub.s32 32, %v74_v36  ;;  %v77_v40 = vshll.u32 %v342_v39, %v74_v36  ;;  %v80_v42 = vshll.u32 %v343_v41, %v74_v36  ;;  %v83_v44 = vshll.u32 %v344_v43, %v74_v36 }
  0x33   :  { %v86_v46 = vshll.u32 %v345_v45, %v74_v36  ;;  %v89_v48 = vshll.u32 %v346_v47, %v74_v36  ;;  %vm92_vm1 = vcmp.lt.s32.totalorder %v73_v37, 1  ;;  %vm95_vm2 = vcmp.lt.s32.totalorder %v73_v37, 4  ;;  %v313_v35 = vpop.eup %312 }
  0x34   :  { %v78_v51 = vshrl.u32 %v343_v41, %v75_v38  ;;  %v81_v52 = vshrl.u32 %v344_v43, %v75_v38  ;;  %v76_v53 = vshrl.u32 %v342_v39, %v75_v38  ;;  %v84_v54 = vshrl.u32 %v345_v45, %v75_v38 }
  0x35   :  { %v87_v55 = vshrl.u32 %v346_v47, %v75_v38  ;;  %v90_v57 = vshrl.u32 %v347_v56, %v75_v38  ;;  %vm94_vm3 = vcmp.lt.s32.totalorder %v73_v37, 3  ;;  %vm93_vm4 = vcmp.lt.s32.totalorder %v73_v37, 2 }
  0x36   :  { %v79_v58 = vor.u32 %v78_v51, %v77_v40  ;;  %v82_v59 = vor.u32 %v81_v52, %v80_v42  ;;  %v85_v60 = vor.u32 %v84_v54, %v83_v44  ;;  %v50_v40 = vmul.f32 0.6931472, %v313_v35 }
  0x37   :  { %v88_v61 = vor.u32 %v87_v55, %v86_v46  ;;  %v91_v62 = vor.u32 %v90_v57, %v89_v48 }
  0x38   :  { %v96_v1 = vsel %vm92_vm1, %v76_v53, %v79_v58  ;;  %v97_v2 = vsel %vm95_vm2, %v85_v60, 2102212464  ;;  %v100_v3 = vsel %vm92_vm1, %v79_v58, %v82_v59  ;;  %v104_v7 = vsel %vm92_vm1, %v82_v59, %v85_v60 }
  0x39   :  { %v101_v4 = vsel %vm95_vm2, %v88_v61, 920167782  ;;  %v98_v5 = vsel %vm94_vm3, %v82_v59, %v97_v2  ;;  %v105_v8 = vsel %vm95_vm2, %v91_v62, 1326507024  ;;  %v51_v45 = vmul.f32 -2.0, %v50_v40 }
  0x3a   :  { %v102_v6 = vsel %vm94_vm3, %v85_v60, %v101_v4  ;;  %v106_v10 = vsel %vm94_vm3, %v88_v61, %v105_v8  ;;  %v99_v11 = vsel %vm93_vm4, %v96_v1, %v98_v5  ;;  %vm152_vm1 = vweird.f32 %v363_v25 }
  0x3b   :  { %v103_v9 = vsel %vm93_vm4, %v100_v3, %v102_v6  ;;  %v107_v12 = vsel %vm93_vm4, %v104_v7, %v106_v10  ;;  %v115_v18 = vmul.u32 %v108_v0, %v99_v11  ;;  %314 = vrsqrt.f32 %v51_v45 }
  0x3c   :  { %v369_v13 = vmul.u32.u64.low %v108_v0, %v103_v9  ;;  %v370_v14 = vmul.u32.u64.high %v108_v0, %v103_v9, %v369_v13  ;;  %v372_v16 = vmul.u32.u64.low %v108_v0, %v107_v12  ;;  %v373_v17 = vmul.u32.u64.high %v108_v0, %v107_v12, %v372_v16 }
  0x3d   :  { %vm54_vm9 = vcmp.eq.f32.partialorder %v51_v45, inf  ;;  %vm56_vm10 = vcmp.eq.f32.partialorder %v51_v45, 0.0  ;;  %v57_v62 = vand.u32 2147483648, %v51_v45  ;;  %vm273_vm2 = vcmask 523264  }
  0x3e   :  { %v118_v19 = vadd.s32 1, %v370_v14  ;;  %vm117_vm5 = vc.u32 %v373_v17, %v369_v13  ;;  %v116_v34 = vadd.s32 %v369_v13, %v373_v17 }
  0x40   :  { %v119_v21 = vsel %vm117_vm5, %v118_v19, %v370_v14 }
  0x41   :  { %v120_v22 = vadd.s32 %v119_v21, %v115_v18 }
  0x43   :  { %v121_v24 = vadd.s32 536870912, %v120_v22 }
  0x45   :  { %v122_v26 = vshrl.u32 %v121_v24, 30 }
  0x47   :  { %v123_v27 = vshll.u32 %v122_v26, 30  ;;  %v146_v50 = vsub.s32 4, %v122_v26 }
  0x48   :  { %v315_v57 = vpop.eup %314 }
  0x49   :  { %v124_v28 = vsub.s32 %v120_v22, %v123_v27  ;;  %v147_v53 = vsel %vm62_vm7, %v146_v50, %v122_v26  ;;  %v53_v60 = vmul.f32 %v315_v57, %v51_v45 }
  0x4a   :  { %v149_v55 = vsel %vm61_vm8, 0, %v147_v53 }
  0x4b   :  { %v126_v29 = vsub.s32 0, %v124_v28  ;;  %v257_v56 = vadd.s32 3, %v149_v55  ;;  %v153_v58 = vand.u32 3, %v149_v55  ;;  %v55_v63 = vsel %vm54_vm9, %v51_v45, %v53_v60 }
  0x4c   :  { %v58_v4 = vsel %vm56_vm10, %v57_v62, %v55_v63 }
  0x4d   :  { %v293_v30 = vmin.u32 %v126_v29, %v124_v28  ;;  %v258_v59 = vand.u32 3, %v257_v56  ;;  %vm158_vm11 = vcmp.eq.s32.totalorder %v153_v58, 2  ;;  %vm155_vm13 = vcmp.eq.s32.totalorder %v153_v58, 0 }
  0x4e   :  { %vm154_vm15 = vcmp.lt.s32.totalorder %v153_v58, 2 }
  0x4f   :  { %v128_v32 = vclz %v293_v30  ;;  %vm263_vm12 = vcmp.eq.s32.totalorder %v258_v59, 2  ;;  %vm260_vm14 = vcmp.eq.s32.totalorder %v258_v59, 0  ;;  %vm259_vm0 = vcmp.lt.s32.totalorder %v258_v59, 2 }
  0x51   :  { %v294_v33 = vadd.s32 4294967294, %v128_v32 }
  0x53   :  { %vm295_vm6 = vcmp.lt.s32.totalorder %v294_v33, 0 }
  0x54   :  { %v131_v36 = vsel %vm295_vm6, 0, %v294_v33 }
  0x55   :  { %v132_v37 = vsub.s32 32, %v131_v36  ;;  %v133_v38 = vshll.u32 %v124_v28, %v131_v36  ;;  %v136_v39 = vsub.s32 4294967266, %v131_v36 }
  0x57   :  { %v134_v41 = vshrl.u32 %v116_v34, %v132_v37  ;;  %v137_v42 = vadd.s32 127, %v136_v39 }
  0x59   :  { %v135_v43 = vor.u32 %v134_v41, %v133_v38  ;;  %v138_v44 = vshll.u32 %v137_v42, 23 }
  0x5b   :  { %v139_v46 = vor.u32 4788187, %v138_v44  ;;  %v142_v47 = vcvt.s32.f32 %v135_v43 }
  0x5d   :  { %v140_v48 = vand.u32 2147483647, %v139_v46 }
  0x5f   :  { %v143_v49 = vmul.f32 %v142_v47, %v140_v48 }
  0x61   :  { %v144_v51 = vxor.u32 2147483648, %v143_v49 }
  0x63   :  { %v145_v52 = vsel %vm62_vm7, %v144_v51, %v143_v49 }
  0x64   :  { %v148_v54 = vsel %vm61_vm8, %v363_v25, %v145_v52 }
  0x65   :  { %316 = vcosq.f32 %v148_v54 }
  0x66   :  { %318 = vsinq.f32 %v148_v54 }
  0x72   :  { %v317_v61 = vpop.eup %316 }
  0x73   :  { %v319_v31 = vpop.eup %318  ;;  %v159_v0 = vxor.u32 2147483648, %v317_v61 }
  0x74   :  { %v156_v1 = vxor.u32 2147483648, %v319_v31 }
  0x75   :  { %v160_v2 = vsel %vm158_vm11, %v159_v0, %v319_v31  ;;  %v265_v3 = vsel %vm263_vm12, %v159_v0, %v319_v31 }
  0x76   :  { %v157_v5 = vsel %vm155_vm13, %v317_v61, %v156_v1  ;;  %v262_v6 = vsel %vm260_vm14, %v317_v61, %v156_v1 }
  0x77   :  { %v161_v7 = vsel %vm154_vm15, %v157_v5, %v160_v2  ;;  %v266_v8 = vsel %vm259_vm0, %v262_v6, %v265_v3 }
  0x78   :  { %v162_v9 = vsel %vm152_vm1, nan, %v161_v7  ;;  %v267_v10 = vsel %vm152_vm1, nan, %v266_v8 }
  0x79   :  { %v163_v11 = vmul.f32 %v162_v9, %v58_v4  ;;  %v268_v12 = vmul.f32 %v267_v10, %v58_v4 }
  0x7b   :  { %270 = vrot.lane.b32.xlu0 %v268_v12, %s348_s0 }
  0xed   :  { %v271_v13 = vpop.permute.xlu0 %270 }
  0xee   :  { %v274_v14 = vsel %vm273_vm2, %v163_v11, %v271_v13 }
  0xef   :  { %275 = vst [vmem:[#allocation4] sm:$0x3] %v274_v14 }
  0xf0   :  { %331 = shalt.err (!%p328_p4)
}
  0xf1   :  { %285 = dma.vmem_to_hbm [thread:$0]  %s283_s10, 32, %s388_s1, [#allocation5]  }
  0xf2   :  { %340 = dma.done.wait [#allocation5], 32  }
  0xf3   :  { %341 = vsyncadd [#allocation5], 4294967264 }
  0xf4   :  { %289 = vsyncpa [#allocation5], 1 }

</bundles_post_ra>
